<compile_context>
chip_gen: v6e
topology: v6e:2x2x1
jax: 0.10.0
libtpu: 0.0.40
codegen_flags: <defaults>
</compile_context>

<pallas_src>
import jax
import jax.numpy as jnp
from jax.experimental import pallas as pl
from jax.experimental.pallas import tpu as pltpu

HIDDEN = 32      # hidden_size
OUTPUT = 16      # output_size (vocab)
MAX_LENGTH = 8   # max_length (small for the test; PyTorch default is 200)
BATCH = 16       # one full bf16 sublane group
LANE = 128


# --------------------------------------------------------------------------
# kernel
# --------------------------------------------------------------------------
def _make_kernel(V, H, L, B):
    G = 2 * H                                   # per-gate width (fwd|bwd)
    R_OUT, R_GI, R_GH, R_EMB = 2 * H, 4 * H, 5 * H, 7 * H
    f32, bf16 = jnp.float32, jnp.bfloat16

    def kernel(ids_ref, h0_ref, enc_ref, w_ref, b_ref, out_ref, h_sc):
        t = pl.program_id(0)

        # t == 0: seed the lane-contiguous f32 hidden carry [h_f | h_b].
        @pl.when(t == 0)
        def _init():
            h_sc[...] = jnp.concatenate([h0_ref[0], h0_ref[1]], axis=1)

        biases = b_ref[...]                     # (8, 256) f32
        h_cat = h_sc[...]                       # (B, 2H) f32, carried across steps
        h_f = h_cat[:, :H]

        # Embedding gather = one-hot @ table (bf16, MXU).  Eval dropout = id.
        # TODO(synk): training-mode dropout (p=0.1) would use pltpu.prng_* here.
        ids = ids_ref[0]                                                   # (B, 1)
        onehot = (ids == jax.lax.broadcasted_iota(jnp.int32, (B, V), 1)).astype(bf16)
        emb = jnp.dot(onehot, w_ref[R_EMB:R_EMB + V, :LANE],
                      preferred_element_type=f32)[:, :H]                   # (B, H)

        # attn_weights = softmax([emb | h_f] @ W_attn + b_attn)
        x_attn = jnp.concatenate([emb, h_f], axis=1).astype(bf16)          # (B, 2H)
        logits = (jnp.dot(x_attn, w_ref[:2 * H, :LANE],
                          preferred_element_type=f32)[:, :L] + biases[0:1, :L])
        m = jnp.max(logits, axis=-1, keepdims=True)
        e = jnp.exp(logits - m)
        attn_w = e * pl.reciprocal(jnp.sum(e, axis=-1, keepdims=True), approx=True)

        # attn_applied = bmm(attn_w, encoder_outputs) on the MXU (relayout-free).
        attn_applied = jnp.einsum('bql,blh->bqh', attn_w[:, None, :], enc_ref[...],
                                  preferred_element_type=f32)[:, 0, :]     # (B, H)

        # x = relu([emb | attn_applied] @ W_comb + b_comb)
        x_comb = jnp.concatenate([emb, attn_applied], axis=1).astype(bf16)
        x = jnp.maximum(
            jnp.dot(x_comb, w_ref[:2 * H, LANE:2 * LANE],
                    preferred_element_type=f32)[:, :H] + biases[1:2, :H], 0.0)

        # Bidirectional GRU step: both directions & all 3 gates in 2 wide dots.
        # Gate columns: [r_f|r_b | z_f|z_b | n_f|n_b], padded to 256 lanes.
        gi = (jnp.dot(x.astype(bf16), w_ref[R_GI:R_GI + H, :],
                      preferred_element_type=f32) + biases[3:4, :])        # (B, 256)
        gh = (jnp.dot(h_cat.astype(bf16), w_ref[R_GH:R_GH + 2 * H, :],
                      preferred_element_type=f32) + biases[4:5, :])        # (B, 256)
        rz = jax.nn.sigmoid(gi[:, :2 * G] + gh[:, :2 * G])    # r|z, one 128-lane op
        r, z = rz[:, :G], rz[:, G:2 * G]
        n = jnp.tanh(gi[:, 2 * G:3 * G] + r * gh[:, 2 * G:3 * G])
        h_new = (1.0 - z) * n + z * h_cat                                  # (B, 2H)
        h_sc[...] = h_new

        # logp = log_softmax([h_f' | h_b'] @ W_out + b_out)
        out_logits = (jnp.dot(h_new.astype(bf16), w_ref[R_OUT:R_OUT + 2 * H, :LANE],
                              preferred_element_type=f32)[:, :V] + biases[2:3, :V])
        mo = jnp.max(out_logits, axis=-1, keepdims=True)
        sh = out_logits - mo
        logp = sh - jnp.log(jnp.sum(jnp.exp(sh), axis=-1, keepdims=True))

        # One lane-dense output slab per step: [logp | h_f' h_b' | attn_w | 0].
        pieces = [logp, h_new, attn_w]
        used = V + 2 * H + L
        if LANE > used:
            pieces.append(jnp.zeros((B, LANE - used), f32))
        out_ref[0] = jnp.concatenate(pieces, axis=1)

    return kernel


# --------------------------------------------------------------------------
# one-time weight packing (hoisted out of the per-step forward)
# --------------------------------------------------------------------------
def _pack_params(params):
    V, H = params["embedding"].shape
    L = params["w_attn"].shape[0]
    G = 2 * H
    assert H % 16 == 0, "hidden_size must be a multiple of 16 for the packed slab"
    assert 3 * G <= 2 * LANE and L <= LANE and V <= LANE
    assert V + 2 * H + L <= LANE, "output slab packs [logp|h|attn] into 128 lanes"

    R_OUT, R_GI, R_GH, R_EMB = 2 * H, 4 * H, 5 * H, 7 * H
    rows = R_EMB + V
    rows += (-rows) % 16                       # bf16 sublane-tile alignment

    w = jnp.zeros((rows, 2 * LANE), jnp.float32)
    w = w.at[0:2 * H, 0:L].set(params["w_attn"].T)                 # attn    (2H->L)
    w = w.at[0:2 * H, LANE:LANE + H].set(params["w_comb"].T)       # combine (2H->H)
    w = w.at[R_OUT:R_OUT + 2 * H, 0:V].set(params["w_out"].T)      # out     (2H->V)
    b_ih = jnp.zeros((3 * G,), jnp.float32)
    b_hh = jnp.zeros((3 * G,), jnp.float32)
    for g in range(3):                          # PyTorch gate order r, z, n
        c0, rsl = g * G, slice(g * H, (g + 1) * H)
        w = w.at[R_GI:R_GI + H, c0:c0 + H].set(params["w_ih_f"][rsl].T)
        w = w.at[R_GI:R_GI + H, c0 + H:c0 + G].set(params["w_ih_b"][rsl].T)
        w = w.at[R_GH:R_GH + H, c0:c0 + H].set(params["w_hh_f"][rsl].T)
        w = w.at[R_GH + H:R_GH + 2 * H, c0 + H:c0 + G].set(params["w_hh_b"][rsl].T)
        b_ih = b_ih.at[c0:c0 + H].set(params["b_ih_f"][rsl])
        b_ih = b_ih.at[c0 + H:c0 + G].set(params["b_ih_b"][rsl])
        b_hh = b_hh.at[c0:c0 + H].set(params["b_hh_f"][rsl])
        b_hh = b_hh.at[c0 + H:c0 + G].set(params["b_hh_b"][rsl])
    w = w.at[R_EMB:R_EMB + V, 0:H].set(params["embedding"])
    wslab = w.astype(jnp.bfloat16)

    biases = jnp.zeros((8, 2 * LANE), jnp.float32)
    biases = biases.at[0, :L].set(params["b_attn"])
    biases = biases.at[1, :H].set(params["b_comb"])
    biases = biases.at[2, :V].set(params["b_out"])
    biases = biases.at[3, :3 * G].set(b_ih)
    biases = biases.at[4, :3 * G].set(b_hh)
    return wslab, biases, (V, H, L)


def make_attention_decoder(params):
    """Packs weights once; returns jitted (forward, decode) callables.

    forward(in_put, hidden, encoder_outputs) mirrors Attention_decoder.forward
    (single step).  decode(id_seq, hidden, encoder_outputs) runs T teacher-
    forced steps in ONE pallas_call (time grid, VMEM-resident weights, hidden
    carried in VMEM scratch) and returns the raw (T, B, 128) output slabs
    laid out as [logp | h_fwd | h_bwd | attn_w | pad]."""
    wslab, biases, (V, H, L) = _pack_params(params)

    def _decode(id_seq, hidden, encoder_outputs):
        T, B = id_seq.shape
        assert hidden.shape == (2, B, H)
        assert encoder_outputs.shape == (L, B, H)
        ids = id_seq.astype(jnp.int32).reshape(T, B, 1)
        # (L,B,H) -> (B,L,H): once per decode call, amortized over T steps.
        enc = jnp.transpose(encoder_outputs, (1, 0, 2))
        kernel = _make_kernel(V, H, L, B)
        return pl.pallas_call(
            kernel,
            out_shape=jax.ShapeDtypeStruct((T, B, LANE), jnp.float32),
            grid=(T,),
            in_specs=[
                pl.BlockSpec((1, B, 1), lambda t: (t, 0, 0)),    # token ids / step
                pl.BlockSpec((2, B, H), lambda t: (0, 0, 0)),    # initial hidden
                pl.BlockSpec((B, L, H), lambda t: (0, 0, 0)),    # encoder outputs
                pl.BlockSpec(wslab.shape, lambda t: (0, 0)),     # all weights (bf16)
                pl.BlockSpec(biases.shape, lambda t: (0, 0)),    # all biases (f32)
            ],
            out_specs=pl.BlockSpec((1, B, LANE), lambda t: (t, 0, 0)),
            scratch_shapes=[pltpu.VMEM((B, 2 * H), jnp.float32)],  # hidden carry
            compiler_params=pltpu.CompilerParams(
                dimension_semantics=("arbitrary",)),   # steps are sequential
        )(ids, hidden, enc, wslab, biases)

    decode = jax.jit(_decode)

    @jax.jit
    def forward(in_put, hidden, encoder_outputs):
        B = in_put.shape[0]
        slab = _decode(in_put.reshape(1, B), hidden, encoder_outputs)[0]
        logp = slab[:, :V]
        h_new = jnp.stack([slab[:, V:V + H], slab[:, V + H:V + 2 * H]])
        attn_w = slab[:, V + 2 * H:V + 2 * H + L]
        return logp, h_new, attn_w

    return forward, decode


# ---------------- pure-JAX reference (for correctness check) ----------------
def reference_forward(params, in_put, hidden, encoder_outputs):
    H = params["embedding"].shape[1]
    emb = params["embedding"][in_put]
    cat = jnp.concatenate([emb, hidden[0]], axis=1)
    attn_w = jax.nn.softmax(cat @ params["w_attn"].T + params["b_attn"], axis=1)
    attn_applied = jnp.einsum('bl,lbh->bh', attn_w, encoder_outputs)
    comb = jnp.concatenate([emb, attn_applied], axis=1) @ params["w_comb"].T + params["b_comb"]
    x = jax.nn.relu(comb)

    def gru(xx, h, wih, whh, bih, bhh):
        gi = xx @ wih.T + bih
        gh = h @ whh.T + bhh
        r = jax.nn.sigmoid(gi[:, :H] + gh[:, :H])
        z = jax.nn.sigmoid(gi[:, H:2 * H] + gh[:, H:2 * H])
        n = jnp.tanh(gi[:, 2 * H:] + r * gh[:, 2 * H:])
        return (1.0 - z) * n + z * h

    h_f = gru(x, hidden[0], params["w_ih_f"], params["w_hh_f"], params["b_ih_f"], params["b_hh_f"])
    h_b = gru(x, hidden[1], params["w_ih_b"], params["w_hh_b"], params["b_ih_b"], params["b_hh_b"])
    out = jnp.concatenate([h_f, h_b], axis=1) @ params["w_out"].T + params["b_out"]
    return jax.nn.log_softmax(out, axis=1), jnp.stack([h_f, h_b]), attn_w


def init_params(key, H, V, L):
    ks = jax.random.split(key, 16)
    s = 0.1
    return {
        "embedding": jax.random.normal(ks[0], (V, H), jnp.float32) * s,
        "w_attn": jax.random.normal(ks[1], (L, 2 * H), jnp.float32) * s,
        "b_attn": jax.random.normal(ks[2], (L,), jnp.float32) * s,
        "w_comb": jax.random.normal(ks[3], (H, 2 * H), jnp.float32) * s,
        "b_comb": jax.random.normal(ks[4], (H,), jnp.float32) * s,
        "w_ih_f": jax.random.normal(ks[5], (3 * H, H), jnp.float32) * s,
        "w_hh_f": jax.random.normal(ks[6], (3 * H, H), jnp.float32) * s,
        "b_ih_f": jax.random.normal(ks[7], (3 * H,), jnp.float32) * s,
        "b_hh_f": jax.random.normal(ks[8], (3 * H,), jnp.float32) * s,
        "w_ih_b": jax.random.normal(ks[9], (3 * H, H), jnp.float32) * s,
        "w_hh_b": jax.random.normal(ks[10], (3 * H, H), jnp.float32) * s,
        "b_ih_b": jax.random.normal(ks[11], (3 * H,), jnp.float32) * s,
        "b_hh_b": jax.random.normal(ks[12], (3 * H,), jnp.float32) * s,
        "w_out": jax.random.normal(ks[13], (V, 2 * H), jnp.float32) * s,
        "b_out": jax.random.normal(ks[14], (V,), jnp.float32) * s,
    }


if __name__ == "__main__":
    key = jax.random.PRNGKey(0)
    k_p, k_in, k_h, k_enc, k_seq = jax.random.split(key, 5)

    params = init_params(k_p, HIDDEN, OUTPUT, MAX_LENGTH)
    forward, decode = make_attention_decoder(params)   # one-time weight packing

    in_put = jax.random.randint(k_in, (BATCH,), 0, OUTPUT, dtype=jnp.int32)
    hidden = jax.random.normal(k_h, (2, BATCH, HIDDEN), jnp.float32) * 0.1
    encoder_outputs = jax.random.normal(k_enc, (MAX_LENGTH, BATCH, HIDDEN), jnp.float32) * 0.1

    # ---- single step (module semantics) ----
    logp, hnew, attn_w = forward(in_put, hidden, encoder_outputs)
    jax.block_until_ready((logp, hnew, attn_w))

    r_logp, r_hnew, r_attn = reference_forward(params, in_put, hidden, encoder_outputs)
    assert jnp.all(jnp.isfinite(logp))
    assert jnp.allclose(logp, r_logp, atol=1e-2, rtol=1e-2), float(jnp.max(jnp.abs(logp - r_logp)))
    assert jnp.allclose(hnew, r_hnew, atol=1e-2, rtol=1e-2), float(jnp.max(jnp.abs(hnew - r_hnew)))
    assert jnp.allclose(attn_w, r_attn, atol=1e-2, rtol=1e-2), float(jnp.max(jnp.abs(attn_w - r_attn)))

    # ---- multi-step amortized decode: T teacher-forced steps, one pallas_call ----
    T = 4
    V, H, L = OUTPUT, HIDDEN, MAX_LENGTH
    id_seq = jax.random.randint(k_seq, (T, BATCH), 0, OUTPUT, dtype=jnp.int32)
    slabs = decode(id_seq, hidden, encoder_outputs)
    jax.block_until_ready(slabs)

    h_ref = hidden
    for t in range(T):
        s_logp, h_ref, s_attn = reference_forward(params, id_seq[t], h_ref, encoder_outputs)
        assert jnp.allclose(slabs[t, :, :V], s_logp, atol=2e-2, rtol=2e-2)
        assert jnp.allclose(slabs[t, :, V + 2 * H:V + 2 * H + L], s_attn, atol=2e-2, rtol=2e-2)
    final_h = jnp.stack([slabs[-1, :, V:V + H], slabs[-1, :, V + H:V + 2 * H]])
    assert jnp.allclose(final_h, h_ref, atol=2e-2, rtol=2e-2)

    print("KERNEL_OK")
</pallas_src>

<mosaic_0001>
module attributes {stable_mosaic.version = 11 : i64} {
  func.func @kernel(%arg0: i32, %arg1: memref<1x16x1xi32, #tpu.memory_space<vmem>>, %arg2: memref<2x16x32xf32, #tpu.memory_space<vmem>>, %arg3: memref<16x8x32xf32, #tpu.memory_space<vmem>>, %arg4: memref<240x256xbf16, #tpu.memory_space<vmem>>, %arg5: memref<8x256xf32, #tpu.memory_space<vmem>>, %arg6: memref<1x16x128xf32, #tpu.memory_space<vmem>>, %arg7: memref<16x64xf32, #tpu.memory_space<vmem>>) attributes {dimension_semantics = [#tpu.dimension_semantics<arbitrary>], iteration_bounds = array<i64: 1>, scalar_prefetch = 0 : i64, scratch_operands = 1 : i64, tpu.core_type = #tpu.core_type<tc>, window_params = [{transform_indices = @transform_0, window_bounds = array<i64: 1, 16, 1>}, {pipeline_mode = #tpu.pipeline_mode<synchronous>, transform_indices = @transform_1, window_bounds = array<i64: 2, 16, 32>}, {pipeline_mode = #tpu.pipeline_mode<synchronous>, transform_indices = @transform_2, window_bounds = array<i64: 16, 8, 32>}, {pipeline_mode = #tpu.pipeline_mode<synchronous>, transform_indices = @transform_3, window_bounds = array<i64: 240, 256>}, {pipeline_mode = #tpu.pipeline_mode<synchronous>, transform_indices = @transform_4, window_bounds = array<i64: 8, 256>}, {transform_indices = @transform_5, window_bounds = array<i64: 1, 16, 128>}]} {
    %c0_i32 = arith.constant 0 : i32
    %0 = arith.cmpi eq, %arg0, %c0_i32 : i32
    %1 = arith.extui %0 : i1 to i32
    %c0_i32_0 = arith.constant 0 : i32
    %2 = arith.cmpi ne, %1, %c0_i32_0 : i32
    scf.if %2 {
      %c0_37 = arith.constant 0 : index
      %c0_38 = arith.constant 0 : index
      %c0_39 = arith.constant 0 : index
      %104 = vector.load %arg2[%c0_37, %c0_38, %c0_39] : memref<2x16x32xf32, #tpu.memory_space<vmem>>, vector<1x16x32xf32>
      %105 = vector.shape_cast %104 : vector<1x16x32xf32> to vector<16x32xf32>
      %c1 = arith.constant 1 : index
      %c0_40 = arith.constant 0 : index
      %c0_41 = arith.constant 0 : index
      %106 = vector.load %arg2[%c1, %c0_40, %c0_41] : memref<2x16x32xf32, #tpu.memory_space<vmem>>, vector<1x16x32xf32>
      %107 = vector.shape_cast %106 : vector<1x16x32xf32> to vector<16x32xf32>
      %108 = tpu.concatenate %105, %107 in 1 : vector<16x32xf32>, vector<16x32xf32> -> vector<16x64xf32>
      %c0_42 = arith.constant 0 : index
      %c0_43 = arith.constant 0 : index
      %109 = vector.load %arg7[%c0_42, %c0_43] : memref<16x64xf32, #tpu.memory_space<vmem>>, vector<16x64xf32>
      tpu.vector_store %arg7[%c0_42, %c0_43], %108 {strides = array<i32>} : memref<16x64xf32, #tpu.memory_space<vmem>>, vector<16x64xf32>,
    } else {
    }
    %c0 = arith.constant 0 : index
    %c0_1 = arith.constant 0 : index
    %3 = vector.load %arg5[%c0, %c0_1] : memref<8x256xf32, #tpu.memory_space<vmem>>, vector<8x256xf32>
    %c0_2 = arith.constant 0 : index
    %c0_3 = arith.constant 0 : index
    %4 = vector.load %arg7[%c0_2, %c0_3] : memref<16x64xf32, #tpu.memory_space<vmem>>, vector<16x64xf32>
    %5 = vector.extract_strided_slice %4 {offsets = [0, 0], sizes = [16, 32], strides = [1, 1]} : vector<16x64xf32> to vector<16x32xf32>
    %c0_4 = arith.constant 0 : index
    %c0_5 = arith.constant 0 : index
    %c0_6 = arith.constant 0 : index
    %6 = vector.load %arg1[%c0_4, %c0_5, %c0_6] : memref<1x16x1xi32, #tpu.memory_space<vmem>>, vector<1x16x1xi32>
    %7 = vector.shape_cast %6 : vector<1x16x1xi32> to vector<16x1xi32>
    %8 = tpu.iota {dimensions = array<i32: 1>} : vector<16x16xi32>
    %9 = vector.broadcast %7 : vector<16x1xi32> to vector<16x16xi32>
    %10 = arith.cmpi eq, %9, %8 : vector<16x16xi32>
    %11 = arith.extui %10 : vector<16x16xi1> to vector<16x16xi32>
    %12 = arith.sitofp %11 : vector<16x16xi32> to vector<16x16xf32>
    %13 = arith.truncf %12 : vector<16x16xf32> to vector<16x16xbf16>
    %c224 = arith.constant 224 : index
    %c0_7 = arith.constant 0 : index
    %14 = vector.load %arg4[%c224, %c0_7] : memref<240x256xbf16, #tpu.memory_space<vmem>>, vector<16x128xbf16>
    %cst = arith.constant dense<0.000000e+00> : vector<16x128xf32>
    %15 = tpu.matmul %13, %14, %cst {dimension_numbers = #tpu.dot_dimension_numbers<[1], [0], [0], [1], [0, 0, 1, 1], [], []>} : vector<16x16xbf16>, vector<16x128xbf16>, vector<16x128xf32> -> vector<16x128xf32>
    %16 = vector.extract_strided_slice %15 {offsets = [0, 0], sizes = [16, 32], strides = [1, 1]} : vector<16x128xf32> to vector<16x32xf32>
    %17 = tpu.concatenate %16, %5 in 1 : vector<16x32xf32>, vector<16x32xf32> -> vector<16x64xf32>
    %18 = arith.truncf %17 : vector<16x64xf32> to vector<16x64xbf16>
    %c0_8 = arith.constant 0 : index
    %c0_9 = arith.constant 0 : index
    %19 = vector.load %arg4[%c0_8, %c0_9] : memref<240x256xbf16, #tpu.memory_space<vmem>>, vector<64x128xbf16>
    %cst_10 = arith.constant dense<0.000000e+00> : vector<16x128xf32>
    %20 = tpu.matmul %18, %19, %cst_10 {dimension_numbers = #tpu.dot_dimension_numbers<[1], [0], [0], [1], [0, 0, 1, 1], [], []>} : vector<16x64xbf16>, vector<64x128xbf16>, vector<16x128xf32> -> vector<16x128xf32>
    %21 = vector.extract_strided_slice %20 {offsets = [0, 0], sizes = [16, 8], strides = [1, 1]} : vector<16x128xf32> to vector<16x8xf32>
    %22 = vector.extract_strided_slice %3 {offsets = [0, 0], sizes = [1, 8], strides = [1, 1]} : vector<8x256xf32> to vector<1x8xf32>
    %23 = vector.broadcast %22 : vector<1x8xf32> to vector<16x8xf32>
    %24 = arith.addf %21, %23 : vector<16x8xf32>
    %cst_11 = arith.constant dense<0xFF800000> : vector<16xf32>
    %25 = vector.multi_reduction <maximumf>, %24, %cst_11 [1] : vector<16x8xf32> to vector<16xf32>
    %26 = vector.shape_cast %25 : vector<16xf32> to vector<16x1xf32>
    %27 = vector.broadcast %26 : vector<16x1xf32> to vector<16x8xf32>
    %28 = arith.subf %24, %27 : vector<16x8xf32>
    %29 = math.exp %28 : vector<16x8xf32>
    %cst_12 = arith.constant dense<0.000000e+00> : vector<16xf32>
    %30 = vector.multi_reduction <add>, %29, %cst_12 [1] : vector<16x8xf32> to vector<16xf32>
    %31 = vector.shape_cast %30 : vector<16xf32> to vector<16x1xf32>
    %32 = tpu.reciprocal %31 {approx = true} : vector<16x1xf32> -> vector<16x1xf32>
    %33 = vector.broadcast %32 : vector<16x1xf32> to vector<16x8xf32>
    %34 = arith.mulf %29, %33 : vector<16x8xf32>
    %35 = vector.shape_cast %34 : vector<16x8xf32> to vector<16x1x8xf32>
    %c0_13 = arith.constant 0 : index
    %c0_14 = arith.constant 0 : index
    %c0_15 = arith.constant 0 : index
    %36 = vector.load %arg3[%c0_13, %c0_14, %c0_15] : memref<16x8x32xf32, #tpu.memory_space<vmem>>, vector<16x8x32xf32>
    "tpu.trace_start"() <{level = 10 : i32, message = "bql,blh->bqh"}> : () -> ()
    %cst_16 = arith.constant dense<0.000000e+00> : vector<16x1x32xf32>
    %37 = tpu.matmul %35, %36, %cst_16 {dimension_numbers = #tpu.dot_dimension_numbers<[2], [1], [1], [2], [0, 0, 0, 1, 1, 2], [0], [0]>} : vector<16x1x8xf32>, vector<16x8x32xf32>, vector<16x1x32xf32> -> vector<16x1x32xf32>
    "tpu.trace_stop"() : () -> ()
    %38 = vector.shape_cast %37 : vector<16x1x32xf32> to vector<16x32xf32>
    %39 = tpu.concatenate %16, %38 in 1 : vector<16x32xf32>, vector<16x32xf32> -> vector<16x64xf32>
    %40 = arith.truncf %39 : vector<16x64xf32> to vector<16x64xbf16>
    %c0_17 = arith.constant 0 : index
    %c128 = arith.constant 128 : index
    %41 = vector.load %arg4[%c0_17, %c128] : memref<240x256xbf16, #tpu.memory_space<vmem>>, vector<64x128xbf16>
    %cst_18 = arith.constant dense<0.000000e+00> : vector<16x128xf32>
    %42 = tpu.matmul %40, %41, %cst_18 {dimension_numbers = #tpu.dot_dimension_numbers<[1], [0], [0], [1], [0, 0, 1, 1], [], []>} : vector<16x64xbf16>, vector<64x128xbf16>, vector<16x128xf32> -> vector<16x128xf32>
    %43 = vector.extract_strided_slice %42 {offsets = [0, 0], sizes = [16, 32], strides = [1, 1]} : vector<16x128xf32> to vector<16x32xf32>
    %44 = vector.extract_strided_slice %3 {offsets = [1, 0], sizes = [1, 32], strides = [1, 1]} : vector<8x256xf32> to vector<1x32xf32>
    %45 = vector.broadcast %44 : vector<1x32xf32> to vector<16x32xf32>
    %46 = arith.addf %43, %45 : vector<16x32xf32>
    %cst_19 = arith.constant 0.000000e+00 : f32
    %47 = vector.broadcast %cst_19 : f32 to vector<16x32xf32>
    %48 = arith.maximumf %46, %47 : vector<16x32xf32>
    %49 = arith.truncf %48 : vector<16x32xf32> to vector<16x32xbf16>
    %c128_20 = arith.constant 128 : index
    %c0_21 = arith.constant 0 : index
    %50 = vector.load %arg4[%c128_20, %c0_21] : memref<240x256xbf16, #tpu.memory_space<vmem>>, vector<32x256xbf16>
    %cst_22 = arith.constant dense<0.000000e+00> : vector<16x256xf32>
    %51 = tpu.matmul %49, %50, %cst_22 {dimension_numbers = #tpu.dot_dimension_numbers<[1], [0], [0], [1], [0, 0, 1, 1], [], []>} : vector<16x32xbf16>, vector<32x256xbf16>, vector<16x256xf32> -> vector<16x256xf32>
    %52 = vector.extract_strided_slice %3 {offsets = [3, 0], sizes = [1, 256], strides = [1, 1]} : vector<8x256xf32> to vector<1x256xf32>
    %53 = vector.broadcast %52 : vector<1x256xf32> to vector<16x256xf32>
    %54 = arith.addf %51, %53 : vector<16x256xf32>
    %55 = arith.truncf %4 : vector<16x64xf32> to vector<16x64xbf16>
    %c160 = arith.constant 160 : index
    %c0_23 = arith.constant 0 : index
    %56 = vector.load %arg4[%c160, %c0_23] : memref<240x256xbf16, #tpu.memory_space<vmem>>, vector<64x256xbf16>
    %cst_24 = arith.constant dense<0.000000e+00> : vector<16x256xf32>
    %57 = tpu.matmul %55, %56, %cst_24 {dimension_numbers = #tpu.dot_dimension_numbers<[1], [0], [0], [1], [0, 0, 1, 1], [], []>} : vector<16x64xbf16>, vector<64x256xbf16>, vector<16x256xf32> -> vector<16x256xf32>
    %58 = vector.extract_strided_slice %3 {offsets = [4, 0], sizes = [1, 256], strides = [1, 1]} : vector<8x256xf32> to vector<1x256xf32>
    %59 = vector.broadcast %58 : vector<1x256xf32> to vector<16x256xf32>
    %60 = arith.addf %57, %59 : vector<16x256xf32>
    %61 = vector.extract_strided_slice %54 {offsets = [0, 0], sizes = [16, 128], strides = [1, 1]} : vector<16x256xf32> to vector<16x128xf32>
    %62 = vector.extract_strided_slice %60 {offsets = [0, 0], sizes = [16, 128], strides = [1, 1]} : vector<16x256xf32> to vector<16x128xf32>
    %63 = arith.addf %61, %62 : vector<16x128xf32>
    %64 = arith.negf %63 : vector<16x128xf32>
    %65 = math.exp %64 : vector<16x128xf32>
    %cst_25 = arith.constant 1.000000e+00 : f32
    %66 = vector.broadcast %cst_25 : f32 to vector<16x128xf32>
    %67 = arith.addf %66, %65 : vector<16x128xf32>
    %68 = arith.divf %66, %67 : vector<16x128xf32>
    %69 = vector.extract_strided_slice %68 {offsets = [0, 0], sizes = [16, 64], strides = [1, 1]} : vector<16x128xf32> to vector<16x64xf32>
    %70 = vector.extract_strided_slice %68 {offsets = [0, 64], sizes = [16, 64], strides = [1, 1]} : vector<16x128xf32> to vector<16x64xf32>
    %71 = vector.extract_strided_slice %54 {offsets = [0, 128], sizes = [16, 64], strides = [1, 1]} : vector<16x256xf32> to vector<16x64xf32>
    %72 = vector.extract_strided_slice %60 {offsets = [0, 128], sizes = [16, 64], strides = [1, 1]} : vector<16x256xf32> to vector<16x64xf32>
    %73 = arith.mulf %69, %72 : vector<16x64xf32>
    %74 = arith.addf %71, %73 : vector<16x64xf32>
    %75 = math.tanh %74 : vector<16x64xf32>
    %cst_26 = arith.constant 1.000000e+00 : f32
    %76 = vector.broadcast %cst_26 : f32 to vector<16x64xf32>
    %77 = arith.subf %76, %70 : vector<16x64xf32>
    %78 = arith.mulf %77, %75 : vector<16x64xf32>
    %79 = arith.mulf %70, %4 : vector<16x64xf32>
    %80 = arith.addf %78, %79 : vector<16x64xf32>
    %c0_27 = arith.constant 0 : index
    %c0_28 = arith.constant 0 : index
    %81 = vector.load %arg7[%c0_27, %c0_28] : memref<16x64xf32, #tpu.memory_space<vmem>>, vector<16x64xf32>
    tpu.vector_store %arg7[%c0_27, %c0_28], %80 {strides = array<i32>} : memref<16x64xf32, #tpu.memory_space<vmem>>, vector<16x64xf32>,
    %82 = arith.truncf %80 : vector<16x64xf32> to vector<16x64xbf16>
    %c64 = arith.constant 64 : index
    %c0_29 = arith.constant 0 : index
    %83 = vector.load %arg4[%c64, %c0_29] : memref<240x256xbf16, #tpu.memory_space<vmem>>, vector<64x128xbf16>
    %cst_30 = arith.constant dense<0.000000e+00> : vector<16x128xf32>
    %84 = tpu.matmul %82, %83, %cst_30 {dimension_numbers = #tpu.dot_dimension_numbers<[1], [0], [0], [1], [0, 0, 1, 1], [], []>} : vector<16x64xbf16>, vector<64x128xbf16>, vector<16x128xf32> -> vector<16x128xf32>
    %85 = vector.extract_strided_slice %84 {offsets = [0, 0], sizes = [16, 16], strides = [1, 1]} : vector<16x128xf32> to vector<16x16xf32>
    %86 = vector.extract_strided_slice %3 {offsets = [2, 0], sizes = [1, 16], strides = [1, 1]} : vector<8x256xf32> to vector<1x16xf32>
    %87 = vector.broadcast %86 : vector<1x16xf32> to vector<16x16xf32>
    %88 = arith.addf %85, %87 : vector<16x16xf32>
    %cst_31 = arith.constant dense<0xFF800000> : vector<16xf32>
    %89 = vector.multi_reduction <maximumf>, %88, %cst_31 [1] : vector<16x16xf32> to vector<16xf32>
    %90 = vector.shape_cast %89 : vector<16xf32> to vector<16x1xf32>
    %91 = vector.broadcast %90 : vector<16x1xf32> to vector<16x16xf32>
    %92 = arith.subf %88, %91 : vector<16x16xf32>
    %93 = math.exp %92 : vector<16x16xf32>
    %cst_32 = arith.constant dense<0.000000e+00> : vector<16xf32>
    %94 = vector.multi_reduction <add>, %93, %cst_32 [1] : vector<16x16xf32> to vector<16xf32>
    %95 = vector.shape_cast %94 : vector<16xf32> to vector<16x1xf32>
    %96 = math.log %95 : vector<16x1xf32>
    %97 = vector.broadcast %96 : vector<16x1xf32> to vector<16x16xf32>
    %98 = arith.subf %92, %97 : vector<16x16xf32>
    %cst_33 = arith.constant 0.000000e+00 : f32
    %99 = vector.broadcast %cst_33 : f32 to vector<16x40xf32>
    %100 = tpu.concatenate %98, %80, %34, %99 in 1 : vector<16x16xf32>, vector<16x64xf32>, vector<16x8xf32>, vector<16x40xf32> -> vector<16x128xf32>
    %c0_34 = arith.constant 0 : index
    %c0_35 = arith.constant 0 : index
    %c0_36 = arith.constant 0 : index
    %101 = vector.load %arg6[%c0_34, %c0_35, %c0_36] : memref<1x16x128xf32, #tpu.memory_space<vmem>>, vector<1x16x128xf32>
    %102 = vector.shape_cast %101 : vector<1x16x128xf32> to vector<16x128xf32>
    %103 = vector.shape_cast %100 : vector<16x128xf32> to vector<1x16x128xf32>
    tpu.vector_store %arg6[%c0_34, %c0_35, %c0_36], %103 {strides = array<i32>} : memref<1x16x128xf32, #tpu.memory_space<vmem>>, vector<1x16x128xf32>,
    return
  }
  func.func @transform_0(%arg0: i32) -> (i32, i32, i32) {
    %c0_i32 = arith.constant 0 : i32
    %c0_i32_0 = arith.constant 0 : i32
    %c0_i32_1 = arith.constant 0 : i32
    return %arg0, %c0_i32, %c0_i32_0 : i32, i32, i32
  }
  func.func @transform_1(%arg0: i32) -> (i32, i32, i32) {
    %c0_i32 = arith.constant 0 : i32
    %c0_i32_0 = arith.constant 0 : i32
    %c0_i32_1 = arith.constant 0 : i32
    %c0_i32_2 = arith.constant 0 : i32
    return %c0_i32, %c0_i32_0, %c0_i32_1 : i32, i32, i32
  }
  func.func @transform_2(%arg0: i32) -> (i32, i32, i32) {
    %c0_i32 = arith.constant 0 : i32
    %c0_i32_0 = arith.constant 0 : i32
    %c0_i32_1 = arith.constant 0 : i32
    %c0_i32_2 = arith.constant 0 : i32
    return %c0_i32, %c0_i32_0, %c0_i32_1 : i32, i32, i32
  }
  func.func @transform_3(%arg0: i32) -> (i32, i32) {
    %c0_i32 = arith.constant 0 : i32
    %c0_i32_0 = arith.constant 0 : i32
    %c0_i32_1 = arith.constant 0 : i32
    return %c0_i32, %c0_i32_0 : i32, i32
  }
  func.func @transform_4(%arg0: i32) -> (i32, i32) {
    %c0_i32 = arith.constant 0 : i32
    %c0_i32_0 = arith.constant 0 : i32
    %c0_i32_1 = arith.constant 0 : i32
    return %c0_i32, %c0_i32_0 : i32, i32
  }
  func.func @transform_5(%arg0: i32) -> (i32, i32, i32) {
    %c0_i32 = arith.constant 0 : i32
    %c0_i32_0 = arith.constant 0 : i32
    %c0_i32_1 = arith.constant 0 : i32
    return %arg0, %c0_i32, %c0_i32_0 : i32, i32, i32
  }
}

</mosaic_0001>

<bundles_post_ra>
// kernel: forward.1
= control target key start
LH: loop header
LB: loop body
LE: loop exit
PB: predicated region body
PF: predicated region fallthrough
CT: control target
= control target key end

     0   :  { %10 = vsyncpa [#allocation4], 0  ;;  %s2355_s18 = smov [#allocation3]   ;;  %s2729_s0 = inlined_call_operand.vmem [shape: s32[1,16,1], index: 0, kind: input, shape index: {}]   ;;  %s2730_s1 = inlined_call_operand.vmem [shape: f32[2,16,32], index: 1, kind: input, shape index: {}]   ;;  %s2731_s2 = inlined_call_operand.vmem [shape: f32[16,8,32], index: 2, kind: input, shape index: {}]   ;;  %s2732_s3 = inlined_call_operand.vmem [shape: bf16[240,256], index: 3, kind: input, shape index: {}]   ;;  %s2733_s4 = inlined_call_operand.hbm [shape: f32[8,256], index: 4, kind: input, shape index: {}]   ;;  %s2734_s5 = inlined_call_operand.vmem [shape: f32[1,16,128], index: 5, kind: output, shape index: {}]  }
   0x1   :  { %s25_s19 = sshll.u32 %s2355_s18, 4  ;;  %s26_s19 = int_to_ptr.vmem [resolvable:$true] %s25_s19 }
   0x2   :  { %s2341_s20 = scalar_lea.vmem %s26_s19, 256  ;;  %p2346_p1 = scmp.lt.s32.totalorder %s26_s19, %s26_s19 }
   0x3   :  { %p2342_p0 = scmp.ne.s32.totalorder %s26_s19, %s2341_s20  ;;  %p2347_p2 = scmp.lt.s32.totalorder %s2341_s20, %s2341_s20 }
   0x5   :  { %p2348_p3 = por %p2347_p2, %p2346_p1 }
   0x7   :  { %p2349_p4 = pnand %p2348_p3, %p2342_p0 }
   0x9   :  { %2352 = shalt.err (!%p2349_p4)
}
   0xa   :  { %28 = dma.hbm_to_vmem [thread:$0]  %s2733_s4, 256, %s26_s19, [#allocation4]  }
   0xb   :  { %2353 = dma.done.wait [#allocation4], 256  }
   0xc   :  { %2354 = vsyncadd [#allocation4], 4294967040  ;;  %v2356_v0 = vmov 0   ;;  %v2357_v1 = vmov 0.0   ;;  %v60_v2 = vld [vmem:[%s2729_s0] sm:$0xff]  ;;  %v61_v3 = vld [vmem:[%s2729_s0 + $0x8] sm:$0xff]  ;;  %v62_v13 = vlaneseq }
   0xd   :  { %2263 = vset.pattern.permute.xlu0 %v2356_v0  ;;  %2133 = vmatprep.subr.bf16.mxu0 %v2357_v1  ;;  %v2031_v4 = vld [vmem:[%s2730_s1 + $0x10] sm:$0xff]  ;;  %s2358_s28 = smov 32   ;;  %v2032_v5 = vld [vmem:[%s2730_s1 + $0x18] sm:$0xff]  ;;  %v2274_v6 = vld [vmem:[%s2732_s3 + $0xe0] ss:$8 sps:$4 sm:$0xff]   ;;  %vm2359_vm0 = vmmov 0  }
   0xe   :  { %2139 = vmatprep.subr.bf16.mxu1 %v2357_v1  ;;  %65 = vperm.xlu0 %2263, %v60_v2   ;;  %v2275_v7 = vld [vmem:[%s2732_s3 + $0x30] ss:$8 sps:$4 sm:$0xff]   ;;  %v2276_v8 = vld [vmem:[%s2732_s3 + $0x20] ss:$8 sps:$4 sm:$0xff]   ;;  %vm50_vm1 = vcmask 261120   ;;  %vm53_vm2 = vcmask 523264  }
   0xf   :  { %44 = vrot.lane.b32.xlu1 %v2031_v4, %s2358_s28  ;;  %2134 = vmatpush3.bf16.msra.mxu0 %v2274_v6  ;;  %v37_v9 = vld [vmem:[%s2730_s1] sm:$0xff]  ;;  %v38_v12 = vld [vmem:[%s2730_s1 + $0x8] sm:$0xff]  ;;  %v63_v16 = vand.u32 127, %v62_v13  ;;  %vm85_vm5 = vcmask 130048   ;;  %v2277_v25 = vld [vmem:[%s2732_s3 + $0x10] ss:$8 sps:$4 sm:$0xff]  }
  0x10   :  { %2135 = vmatprep.mubr.msk.bf16.mxu0 %vm2359_vm0, %v2357_v1  ;;  %2147 = vmatprep.mubr.msk.bf16.mxu1 %vm2359_vm0, %v2357_v1  ;;  %v2278_v26 = vld [vmem:[%s2732_s3] ss:$8 sps:$4 sm:$0xff]   ;;  %v2470_v37 = vshrl.u32 %v62_v13, 7  ;;  %v2473_v39 = vld [vmem:[#allocation3] sm:$0xff]  ;;  %vm225_vm6 = vcmask 64512   ;;  %vm1533_vm7 = vcmask 1041409  }
  0x11   :  { %2151 = vmatprep.subr.mxu0 %v2357_v1  ;;  %2140 = vmatpush3.bf16.msra.mxu1 %v2275_v7  ;;  %v348_v59 = vld [vmem:[%s2731_s2] sm:$0xff]  ;;  %v2360_v63 = vmov 1966171168   ;;  %vm1536_vm8 = vcmask 1042434   ;;  %vm1539_vm9 = vcmask 1043459   ;;  %vm1542_vm10 = vcmask 1044484  }
  0x12   :  { %68 = vperm.xlu0 %2263, %v61_v3   ;;  %2141 = vmatprep.subr.bf16.mxu1 %v2357_v1  ;;  %v221_v38 = vsub.s32 0, %v2470_v37  ;;  %v352_v60 = vld [vmem:[%s2731_s2 + $0x20] sm:$0xff]  ;;  %v252_v2 = vunpack.c.l.s4 %v2360_v63  ;;  %vm1545_vm11 = vcmask 1045509   ;;  %vm1548_vm12 = vcmask 1046534   ;;  %s2361_s30 = smov 64  }
  0x13   :  { %46 = vrot.lane.b32.xlu1 %v2032_v5, %s2358_s28  ;;  %vm1551_vm13 = vcmask 1047559   ;;  %vm2018_vm14 = vcmask 654336   ;;  %vm2021_vm15 = vcmask 719872  }
  0x14   :  { %v222_v40 = vrot.slane %v2473_v39, %v221_v38  ;;  %v253_v3 = vunpack.c.0.s8 %v252_v2 }
  0x15   :  { %2142 = vmatpush3.bf16.msra.mxu1 %v2276_v8 }
  0x16   :  { %2143 = vmatprep.subr.bf16.mxu1 %v2357_v1  ;;  %v2489_v4 = vsub.s32 %v253_v3, %v2470_v37 }
  0x19   :  { %2144 = vmatpush3.bf16.msra.mxu1 %v2277_v25  ;;  %v351_v25 = vld [vmem:[%s2731_s2 + $0x18] sm:$0xff] }
  0x1a   :  { %2145 = vmatprep.subr.bf16.mxu1 %v2357_v1 }
  0x1d   :  { %2146 = vmatpush3.bf16.msra.mxu1 %v2278_v26 }
  0x1e   :  { %2171 = vmatprep.subr.mxu1 %v2357_v1 }
  0x81   :  { %v45_v10 = vpop.permute.xlu1 %44 }
  0x82   :  { %v51_v11 = vsel %vm50_vm1, %v37_v9, %v45_v10 }
  0x83   :  { %54 = vst.msk [vmem:[#allocation2] sm:$0xff] %vm53_vm2, %v51_v11  ;;  %v349_v11 = vld [vmem:[%s2731_s2 + $0x8] sm:$0xff] }
  0x85   :  { %v47_v14 = vpop.permute.xlu1 %46 }
  0x86   :  { %v52_v15 = vsel %vm50_vm1, %v38_v12, %v47_v14 }
  0x87   :  { %55 = vst.msk [vmem:[#allocation2 + $0x8] sm:$0xff] %vm53_vm2, %v52_v15 }
  0x89   :  { %v66_v17 = vpop.permute.xlu0 %65 }
  0x8a   :  { %v2439_v18 = vld [vmem:[#allocation2] sm:$0xff]  ;;  %vm70_vm3 = vcmp.eq.s32.totalorder %v66_v17, %v63_v16 }
  0x8b   :  { %v2033_v22 = vsel %vm70_vm3, 1.0, %v2357_v1 }
  0x8d   :  { %v69_v19 = vpop.permute.xlu0 %68 }
  0x8e   :  { %v2441_v20 = vld [vmem:[#allocation2 + $0x8] sm:$0xff]  ;;  %vm71_vm4 = vcmp.eq.s32.totalorder %v69_v19, %v63_v16  ;;  %v354_v16 = vld [vmem:[%s2731_s2 + $0x30] sm:$0xff] }
  0x8f   :  { %v2264_v21 = vpack.i.bf16 %v2441_v20, %v2439_v18  ;;  %v2034_v23 = vsel %vm71_vm4, 1.0, %v2357_v1  ;;  %v350_v19 = vld [vmem:[%s2731_s2 + $0x10] sm:$0xff] }
  0x90   :  { %v76_v24 = vpack.c.bf16 %v2034_v23, %v2033_v22  ;;  %v356_v22 = vld [vmem:[%s2731_s2 + $0x40] sm:$0xff] }
  0x91   :  { %2265 = vrot.lane.b32.xlu0 %v2264_v21, %s2358_s28 }
  0x92   :  { %2136 = vmatmul.mubr.msk.bf16.vlgmr.msra.gmra.mxu0 %vm85_vm5, %v76_v24 }
  0x93   :  { %2153 = vmatprep.mubr.msk.f32.mxu0 %vm2359_vm0, %v2357_v1  ;;  %2152 = vmatpush3.msra.mxu0 %v348_v59 }
  0x94   :  { %2156 = vmatprep.subr.mxu0 %v2357_v1 }
 0x103   :  { %v2266_v27 = vpop.permute.xlu0 %2265 }
 0x104   :  { %v2267_v29 = vunpack.i.l.bf16 %v2266_v27  ;;  %v2268_v31 = vunpack.i.h.bf16 %v2266_v27  ;;  %v358_v27 = vld [vmem:[%s2731_s2 + $0x50] sm:$0xff] }
 0x152   :  { %v2459_v28 = vpop.f32.mrf.mxu0 }
 0x153   :  { %v139_v33 = vsel %vm50_vm1, %v2459_v28, %v2267_v29 }
 0x154   :  { %v2137_v30 = vpop.f32.mrf.mxu0 }
 0x156   :  { %v2461_v32 = vpop.f32.mrf.mxu0 }
 0x157   :  { %v140_v34 = vsel %vm50_vm1, %v2461_v32, %v2268_v31  ;;  %v353_v31 = vld [vmem:[%s2731_s2 + $0x28] sm:$0xff] }
 0x158   :  { %v141_v35 = vpack.c.bf16 %v140_v34, %v139_v33  ;;  %v2138_v36 = vpop.f32.mrf.mxu0 }
 0x15a   :  { %2148 = vmatmul.mubr.msk.bf16.vlgmr.msra.gmra.mxu1 %vm53_vm2, %v141_v35  ;;  %v360_v35 = vld [vmem:[%s2731_s2 + $0x60] sm:$0xff] }
 0x15b   :  { %2173 = vmatprep.mubr.msk.f32.mxu1 %vm2359_vm0, %v2357_v1  ;;  %2172 = vmatpush3.msra.mxu1 %v352_v60 }
 0x15c   :  { %2181 = vmatprep.subr.mxu1 %v2357_v1 }
 0x21a   :  { %v212_v41 = vpop.f32.mrf.mxu1 }
 0x21b   :  { %v223_v42 = vadd.f32 %v222_v40, %v212_v41 }
 0x21c   :  { %v2149_v43 = vpop.f32.mrf.mxu1 }
 0x21d   :  { %v226_v44 = vsel %vm225_vm6, %v223_v42, -inf }
 0x21e   :  { %227 = vmax.xlane.f32.xlu1 %v226_v44  ;;  %v215_v45 = vpop.f32.mrf.mxu1  ;;  %v357_v44 = vld [vmem:[%s2731_s2 + $0x48] sm:$0xff] }
 0x21f   :  { %v224_v46 = vadd.f32 %v222_v40, %v215_v45  ;;  %v355_v40 = vld [vmem:[%s2731_s2 + $0x38] sm:$0xff] }
 0x220   :  { %v2150_v47 = vpop.f32.mrf.mxu1 }
 0x221   :  { %v229_v48 = vsel %vm225_vm6, %v224_v46, -inf }
 0x222   :  { %230 = vmax.xlane.f32.xlu0 %v229_v48  ;;  %v359_v48 = vld [vmem:[%s2731_s2 + $0x58] sm:$0xff] }
 0x2a7   :  { %v228_v49 = vpop.xlane.xlu1 %227 }
 0x2a8   :  { %v232_v50 = vsub.f32 %v223_v42, %v228_v49  ;;  %v362_v42 = vld [vmem:[%s2731_s2 + $0x70] sm:$0xff] }
 0x2aa   :  { %v234_v51 = vmul.f32 1.442695, %v232_v50  ;;  %v361_v50 = vld [vmem:[%s2731_s2 + $0x68] sm:$0xff] }
 0x2ab   :  { %v231_v52 = vpop.xlane.xlu0 %230 }
 0x2ac   :  { %2305 = vpow2.f32 %v234_v51  ;;  %v233_v53 = vsub.f32 %v224_v46, %v231_v52 }
 0x2ae   :  { %v236_v54 = vmul.f32 1.442695, %v233_v53  ;;  %v363_v53 = vld [vmem:[%s2731_s2 + $0x78] sm:$0xff] }
 0x2b0   :  { %2307 = vpow2.f32 %v236_v54 }
 0x2b9   :  { %v2306_v55 = vpop.eup %2305 }
 0x2ba   :  { %v238_v56 = vsel %vm225_vm6, %v2306_v55, 0.0 }
 0x2bb   :  { %239 = vadd.xlane.f32.xlu0 %v238_v56  ;;  %v2280_v56 = vld [vmem:[%s2732_s3 + $0x24] ss:$8 sps:$4 sm:$0xff]  }
 0x2bd   :  { %v2308_v57 = vpop.eup %2307 }
 0x2be   :  { %v241_v58 = vsel %vm225_vm6, %v2308_v57, 0.0 }
 0x2bf   :  { %242 = vadd.xlane.f32.xlu1 %v241_v58 }
 0x344   :  { %v240_v61 = vpop.xlane.xlu0 %239 }
 0x345   :  { %2309 = vrcp.f32 %v240_v61 }
 0x348   :  { %v243_v62 = vpop.xlane.xlu1 %242 }
 0x349   :  { %2311 = vrcp.f32 %v243_v62 }
 0x352   :  { %v2310_v5 = vpop.eup %2309 }
 0x353   :  { %v2491_v6 = vmul.f32 %v2310_v5, %v2306_v55  ;;  %v2279_v55 = vld [vmem:[%s2732_s3 + $0x34] ss:$8 sps:$4 sm:$0xff]  }
 0x355   :  { %v257_v7 = vrot.slane %v2491_v6, %v2489_v4  ;;  %v250_v8 = vcombine.high %v2491_v6, %v2491_v6 }
 0x356   :  { %v2312_v9 = vpop.eup %2311 }
 0x357   :  { %v273_v10 = vrot.slane %v257_v7, %v2489_v4  ;;  %v264_v12 = vrot.slane %v250_v8, %v2489_v4  ;;  %v265_v13 = vcombine.high %v257_v7, %v257_v7  ;;  %v2502_v14 = vmul.f32 %v2312_v9, %v2308_v57  ;;  %v2281_v57 = vld [vmem:[%s2732_s3 + $0x14] ss:$8 sps:$4 sm:$0xff]  }
 0x359   :  { %2154 = vmatmul.mubr.msk.f32.vlgmr.msra.gmra.mxu0 %vm225_vm6, %v273_v10  ;;  %v280_v15 = vrot.slane %v264_v12, %v2489_v4  ;;  %v287_v17 = vrot.slane %v265_v13, %v2489_v4  ;;  %v306_v23 = vrot.slane %v2502_v14, %v2489_v4  ;;  %v295_v24 = vcombine.high %v273_v10, %v273_v10 }
 0x35a   :  { %2157 = vmatpush3.msra.mxu0 %v349_v11  ;;  %2158 = vmatprep.mubr.msk.f32.mxu0 %vm2359_vm0, %v2357_v1  ;;  %v299_v29 = vcombine.high %v2502_v14, %v2502_v14  ;;  %v266_v33 = vcombine.high %v264_v12, %v264_v12 }
 0x35b   :  { %2174 = vmatmul.mubr.msk.f32.vlgmr.msra.gmra.mxu1 %vm225_vm6, %v280_v15  ;;  %2161 = vmatprep.subr.mxu0 %v2357_v1  ;;  %v296_v21 = vcombine.high %v280_v15, %v280_v15  ;;  %v322_v26 = vrot.slane %v306_v23, %v2489_v4  ;;  %v297_v30 = vcombine.high %v287_v17, %v287_v17 }
 0x35c   :  { %2182 = vmatpush3.msra.mxu1 %v354_v16  ;;  %2183 = vmatprep.mubr.msk.f32.mxu1 %vm2359_vm0, %v2357_v1  ;;  %v313_v36 = vrot.slane %v299_v29, %v2489_v4  ;;  %v294_v38 = vrot.slane %v266_v33, %v2489_v4  ;;  %v314_v45 = vcombine.high %v306_v23, %v306_v23 }
 0x35d   :  { %2159 = vmatmul.mubr.msk.f32.vlgmr.msra.gmra.mxu0 %vm225_vm6, %v287_v17  ;;  %2191 = vmatprep.subr.mxu1 %v2357_v1  ;;  %v344_v34 = vcombine.high %v322_v26, %v322_v26 }
 0x35e   :  { %2162 = vmatpush3.msra.mxu0 %v350_v19  ;;  %2163 = vmatprep.mubr.msk.f32.mxu0 %vm2359_vm0, %v2357_v1  ;;  %v329_v41 = vrot.slane %v313_v36, %v2489_v4  ;;  %v298_v43 = vcombine.high %v294_v38, %v294_v38  ;;  %v336_v47 = vrot.slane %v314_v45, %v2489_v4  ;;  %v2282_v45 = vld [vmem:[%s2732_s3 + $0x4] ss:$8 sps:$4 sm:$0xff]  }
 0x35f   :  { %2184 = vmatmul.mubr.msk.f32.vlgmr.msra.gmra.mxu1 %vm225_vm6, %v296_v21  ;;  %2166 = vmatprep.subr.mxu0 %v2357_v1  ;;  %v315_v51 = vcombine.high %v313_v36, %v313_v36 }
 0x360   :  { %2192 = vmatpush3.msra.mxu1 %v356_v22  ;;  %2193 = vmatprep.mubr.msk.f32.mxu1 %vm2359_vm0, %v2357_v1  ;;  %v345_v46 = vcombine.high %v329_v41, %v329_v41  ;;  %v346_v49 = vcombine.high %v336_v47, %v336_v47 }
 0x361   :  { %2164 = vmatmul.mubr.msk.f32.vlgmr.msra.gmra.mxu0 %vm225_vm6, %v295_v24  ;;  %2201 = vmatprep.subr.mxu1 %v2357_v1  ;;  %v343_v52 = vrot.slane %v315_v51, %v2489_v4 }
 0x362   :  { %2167 = vmatpush3.msra.mxu0 %v351_v25  ;;  %2168 = vmatprep.mubr.msk.f32.mxu0 %vm2359_vm0, %v2357_v1 }
 0x363   :  { %2194 = vmatmul.mubr.msk.f32.vlgmr.msra.gmra.mxu1 %vm225_vm6, %v322_v26  ;;  %2176 = vmatprep.subr.mxu0 %v2357_v1  ;;  %v347_v54 = vcombine.high %v343_v52, %v343_v52 }
 0x364   :  { %2202 = vmatpush3.msra.mxu1 %v358_v27  ;;  %2203 = vmatprep.mubr.msk.f32.mxu1 %vm2359_vm0, %v2357_v1 }
 0x365   :  { %2169 = vmatmul.mubr.msk.f32.vlgmr.msra.gmra.mxu0 %vm225_vm6, %v297_v30  ;;  %2211 = vmatprep.subr.mxu1 %v2357_v1 }
 0x366   :  { %2177 = vmatpush3.msra.mxu0 %v353_v31  ;;  %2178 = vmatprep.mubr.msk.f32.mxu0 %vm2359_vm0, %v2357_v1 }
 0x367   :  { %2204 = vmatmul.mubr.msk.f32.vlgmr.msra.gmra.mxu1 %vm225_vm6, %v344_v34  ;;  %2186 = vmatprep.subr.mxu0 %v2357_v1 }
 0x368   :  { %2212 = vmatpush3.msra.mxu1 %v360_v35  ;;  %2213 = vmatprep.mubr.msk.f32.mxu1 %vm2359_vm0, %v2357_v1 }
 0x369   :  { %2179 = vmatmul.mubr.msk.f32.vlgmr.msra.gmra.mxu0 %vm225_vm6, %v294_v38  ;;  %2221 = vmatprep.subr.mxu1 %v2357_v1 }
 0x36a   :  { %2187 = vmatpush3.msra.mxu0 %v355_v40  ;;  %2188 = vmatprep.mubr.msk.f32.mxu0 %vm2359_vm0, %v2357_v1 }
 0x36b   :  { %2214 = vmatmul.mubr.msk.f32.vlgmr.msra.gmra.mxu1 %vm225_vm6, %v329_v41  ;;  %2196 = vmatprep.subr.mxu0 %v2357_v1 }
 0x36c   :  { %2222 = vmatpush3.msra.mxu1 %v362_v42  ;;  %2223 = vmatprep.mubr.msk.f32.mxu1 %vm2359_vm0, %v2357_v1 }
 0x36d   :  { %2189 = vmatmul.mubr.msk.f32.vlgmr.msra.gmra.mxu0 %vm225_vm6, %v298_v43  ;;  %2231 = vmatprep.subr.bf16.mxu1 %v2357_v1 }
 0x36e   :  { %2197 = vmatpush3.msra.mxu0 %v357_v44  ;;  %2198 = vmatprep.mubr.msk.f32.mxu0 %vm2359_vm0, %v2357_v1 }
 0x36f   :  { %2224 = vmatmul.mubr.msk.f32.vlgmr.msra.gmra.mxu1 %vm225_vm6, %v345_v46  ;;  %2206 = vmatprep.subr.mxu0 %v2357_v1 }
 0x370   :  { %2239 = vmatprep.mubr.msk.bf16.mxu1 %vm2359_vm0, %v2357_v1  ;;  %2232 = vmatpush3.bf16.msra.mxu1 %v2279_v55 }
 0x371   :  { %2199 = vmatmul.mubr.msk.f32.vlgmr.msra.gmra.mxu0 %vm225_vm6, %v336_v47  ;;  %2233 = vmatprep.subr.bf16.mxu1 %v2357_v1 }
 0x372   :  { %2207 = vmatpush3.msra.mxu0 %v359_v48  ;;  %2208 = vmatprep.mubr.msk.f32.mxu0 %vm2359_vm0, %v2357_v1 }
 0x373   :  { %2216 = vmatprep.subr.mxu0 %v2357_v1 }
 0x374   :  { %2234 = vmatpush3.bf16.msra.mxu1 %v2280_v56 }
 0x375   :  { %2209 = vmatmul.mubr.msk.f32.vlgmr.msra.gmra.mxu0 %vm225_vm6, %v346_v49  ;;  %2235 = vmatprep.subr.bf16.mxu1 %v2357_v1 }
 0x376   :  { %2217 = vmatpush3.msra.mxu0 %v361_v50  ;;  %2218 = vmatprep.mubr.msk.f32.mxu0 %vm2359_vm0, %v2357_v1 }
 0x377   :  { %2226 = vmatprep.subr.mxu0 %v2357_v1 }
 0x378   :  { %2236 = vmatpush3.bf16.msra.mxu1 %v2281_v57 }
 0x379   :  { %2219 = vmatmul.mubr.msk.f32.vlgmr.msra.gmra.mxu0 %vm225_vm6, %v343_v52  ;;  %2237 = vmatprep.subr.bf16.mxu1 %v2357_v1 }
 0x37a   :  { %2227 = vmatpush3.msra.mxu0 %v363_v53  ;;  %2228 = vmatprep.mubr.msk.f32.mxu0 %vm2359_vm0, %v2357_v1 }
 0x37c   :  { %2238 = vmatpush3.bf16.msra.mxu1 %v2282_v45 }
 0x37d   :  { %2229 = vmatmul.mubr.msk.f32.vlgmr.msra.gmra.mxu0 %vm225_vm6, %v347_v54  ;;  %2243 = vmatprep.subr.bf16.mxu1 %v2357_v1 }
 0x37e   :  { %1728 = vmatprep.mubr.bf16.mxu0 %v2356_v0 }
 0x419   :  { %v432_v58 = vpop.f32.mrf.mxu0 }
 0x41b   :  { %v2155_v59 = vpop.f32.mrf.mxu0  ;;  %v720_v60 = vpop.f32.mrf.mxu1 }
 0x41c   :  { %v1541_v46 = vrot.slane %v720_v60, 4 }
 0x41d   :  { %v504_v61 = vpop.f32.mrf.mxu0  ;;  %v2175_v62 = vpop.f32.mrf.mxu1 }
 0x41e   :  { %v1532_v25 = vrot.slane %v504_v61, 7 }
 0x41f   :  { %v2160_v63 = vpop.f32.mrf.mxu0  ;;  %v864_v2 = vpop.f32.mrf.mxu1 }
 0x420   :  { %v1534_v35 = vsel %vm1533_vm7, %v1532_v25, %v432_v58  ;;  %v1547_v56 = vrot.slane %v864_v2, 2 }
 0x421   :  { %v576_v3 = vpop.f32.mrf.mxu0  ;;  %v2185_v4 = vpop.f32.mrf.mxu1 }
 0x422   :  { %v1535_v27 = vrot.slane %v576_v3, 6 }
 0x423   :  { %v2165_v5 = vpop.f32.mrf.mxu0  ;;  %v1008_v7 = vpop.f32.mrf.mxu1 }
 0x424   :  { %v1537_v38 = vsel %vm1536_vm8, %v1535_v27, %v1534_v35  ;;  %v2289_v27 = vld [vmem:[%s2732_s3 + $0xd0] ss:$8 sps:$4 sm:$0xff]   ;;  %v2300_v35 = vld [vmem:[%s2732_s3 + $0xa4] ss:$8 sps:$4 sm:$0xff]  }
 0x425   :  { %v648_v8 = vpop.f32.mrf.mxu0  ;;  %v2195_v9 = vpop.f32.mrf.mxu1 }
 0x426   :  { %v1538_v30 = vrot.slane %v648_v8, 5 }
 0x427   :  { %v2170_v10 = vpop.f32.mrf.mxu0  ;;  %v1152_v11 = vpop.f32.mrf.mxu1 }
 0x428   :  { %v1555_v33 = vrot.slane %v1152_v11, 6  ;;  %v1540_v42 = vsel %vm1539_vm9, %v1538_v30, %v1537_v38  ;;  %v2285_v11 = vld [vmem:[%s2732_s3 + $0x94] ss:$8 sps:$4 sm:$0xff]   ;;  %v2294_v30 = vld [vmem:[%s2732_s3 + $0xc4] ss:$8 sps:$4 sm:$0xff]  }
 0x429   :  { %v792_v12 = vpop.f32.mrf.mxu0  ;;  %v2205_v13 = vpop.f32.mrf.mxu1  ;;  %v1543_v50 = vsel %vm1542_vm10, %v1541_v46, %v1540_v42  ;;  %1708 = vmatprep.subr.bf16.mxu0 %v2285_v11  ;;  %v1750_v42 = vsub.s32 4, %v2470_v37 }
 0x42a   :  { %v1544_v43 = vrot.slane %v792_v12, 3  ;;  %v2283_v12 = vld [vmem:[%s2732_s3 + $0x90] ss:$8 sps:$4 sm:$0xff]   ;;  %v2291_v13 = vld [vmem:[%s2732_s3 + $0xd4] ss:$8 sps:$4 sm:$0xff]  }
 0x42b   :  { %v2180_v15 = vpop.f32.mrf.mxu0  ;;  %v1296_v16 = vpop.f32.mrf.mxu1  ;;  %1709 = vmatpush1.bf16.msra.mxu0 %v2283_v12  ;;  %v1751_v45 = vrot.slane %v2473_v39, %v1750_v42 }
 0x42c   :  { %v1559_v47 = vrot.slane %v1296_v16, 4  ;;  %v1546_v53 = vsel %vm1545_vm11, %v1544_v43, %v1543_v50  ;;  %v1654_v15 = vsub.s32 1, %v2470_v37 }
 0x42d   :  { %v936_v17 = vpop.f32.mrf.mxu0  ;;  %v2215_v19 = vpop.f32.mrf.mxu1  ;;  %v1549_v61 = vsel %vm1548_vm12, %v1547_v56, %v1546_v53 }
 0x42e   :  { %v1550_v54 = vrot.slane %v936_v17, 1  ;;  %v1655_v16 = vrot.slane %v2473_v39, %v1654_v15 }
 0x42f   :  { %v2190_v21 = vpop.f32.mrf.mxu0  ;;  %v1440_v22 = vpop.f32.mrf.mxu1 }
 0x430   :  { %v1563_v57 = vrot.slane %v1440_v22, 2  ;;  %v1552_v63 = vsel %vm1551_vm13, %v1550_v54, %v1549_v61  ;;  %v57_v61 = vld [vmem:[#allocation3 + $0x8] sm:$0xff] }
 0x431   :  { %v1080_v23 = vpop.f32.mrf.mxu0  ;;  %v2225_v24 = vpop.f32.mrf.mxu1 }
 0x432   :  { %v1553_v26 = vrot.slane %v1080_v23, 7 }
 0x433   :  { %v2200_v29 = vpop.f32.mrf.mxu0 }
 0x434   :  { %v1554_v31 = vsel %vm1533_vm7, %v1553_v26, %v1008_v7 }
 0x435   :  { %v1224_v34 = vpop.f32.mrf.mxu0  ;;  %v1556_v40 = vsel %vm1536_vm8, %v1555_v33, %v1554_v31  ;;  %v2292_v31 = vld [vmem:[%s2732_s3 + $0xc0] ss:$8 sps:$4 sm:$0xff]   ;;  %v2297_v33 = vld [vmem:[%s2732_s3 + $0xb4] ss:$8 sps:$4 sm:$0xff]  }
 0x436   :  { %v1557_v36 = vrot.slane %v1224_v34, 5  ;;  %v2295_v34 = vld [vmem:[%s2732_s3 + $0xb0] ss:$8 sps:$4 sm:$0xff]  }
 0x437   :  { %v2210_v41 = vpop.f32.mrf.mxu0 }
 0x438   :  { %v1558_v44 = vsel %vm1539_vm9, %v1557_v36, %v1556_v40  ;;  %v1739_v36 = vpack.c.bf16 %v2441_v20, %v2439_v18  ;;  %v1667_v41 = vsub.s32 3, %v2470_v37 }
 0x439   :  { %v1368_v48 = vpop.f32.mrf.mxu0  ;;  %v1560_v51 = vsel %vm1542_vm10, %v1559_v47, %v1558_v44 }
 0x43a   :  { %v1561_v49 = vrot.slane %v1368_v48, 3  ;;  %v1668_v44 = vrot.slane %v2473_v39, %v1667_v41 }
 0x43b   :  { %v2220_v52 = vpop.f32.mrf.mxu0 }
 0x43c   :  { %v1562_v55 = vsel %vm1545_vm11, %v1561_v49, %v1560_v51 }
 0x43d   :  { %v1512_v58 = vpop.f32.mrf.mxu0  ;;  %v1564_v62 = vsel %vm1548_vm12, %v1563_v57, %v1562_v55 }
 0x43e   :  { %v1565_v59 = vrot.slane %v1512_v58, 1 }
 0x43f   :  { %v2230_v60 = vpop.f32.mrf.mxu0 }
 0x440   :  { %v1566_v3 = vsel %vm1551_vm13, %v1565_v59, %v1564_v62  ;;  %v1755_v62 = vrot.slane %v57_v61, %v1750_v42 }
 0x441   :  { %v2269_v4 = vpack.i.bf16 %v1566_v3, %v1552_v63  ;;  %v1672_v63 = vrot.slane %v57_v61, %v1667_v41 }
 0x443   :  { %2270 = vrot.lane.b32.xlu0 %v2269_v4, %s2358_s28 }
 0x447   :  { %1874 = vrot.lane.b32.xlu0 %v2439_v18, %s2361_s30 }
 0x4b5   :  { %v2271_v5 = vpop.permute.xlu0 %2270 }
 0x4b6   :  { %v2273_v7 = vunpack.i.h.bf16 %v2271_v5  ;;  %v2272_v8 = vunpack.i.l.bf16 %v2271_v5 }
 0x4b8   :  { %v1574_v2 = vsel %vm50_vm1, %v2461_v32, %v2273_v7  ;;  %v1573_v9 = vsel %vm50_vm1, %v2459_v28, %v2272_v8  ;;  %v2288_v28 = vld [vmem:[%s2732_s3 + $0x84] ss:$8 sps:$4 sm:$0xff]   ;;  %v2286_v32 = vld [vmem:[%s2732_s3 + $0x80] ss:$8 sps:$4 sm:$0xff]  }
 0x4b9   :  { %v1575_v10 = vpack.c.bf16 %v1574_v2, %v1573_v9  ;;  %1710 = vmatprep.subr.bf16.mxu0 %v2288_v28 }
 0x4ba   :  { %1711 = vmatpush1.bf16.msra.mxu0 %v2286_v32 }
 0x4bb   :  { %2240 = vmatmul.mubr.msk.bf16.vlgmr.msra.gmra.mxu1 %vm53_vm2, %v1575_v10  ;;  %1807 = vmatprep.subr.bf16.mxu0 %v2291_v13  ;;  %v2301_v13 = vld [vmem:[%s2732_s3 + $0x70] ss:$8 sps:$4 sm:$0xff]  }
 0x4bc   :  { %2251 = vmatprep.mubr.msk.bf16.mxu1 %vm2359_vm0, %v2357_v1  ;;  %2244 = vmatpush3.bf16.msra.mxu1 %v2301_v13 }
 0x4bd   :  { %2245 = vmatprep.subr.bf16.mxu1 %v2357_v1 }
 0x57b   :  { %v1645_v17 = vpop.f32.mrf.mxu1 }
 0x57c   :  { %v1656_v21 = vadd.f32 %v1655_v16, %v1645_v17  ;;  %v2303_v17 = vld [vmem:[%s2732_s3 + $0x50] ss:$8 sps:$4 sm:$0xff]  }
 0x57d   :  { %v2241_v19 = vpop.f32.mrf.mxu1 }
 0x57e   :  { %v1658_v25 = vmax.f32 %v1656_v21, 0.0  ;;  %v2304_v19 = vld [vmem:[%s2732_s3 + $0x40] ss:$8 sps:$4 sm:$0xff]  }
 0x57f   :  { %v1648_v22 = vpop.f32.mrf.mxu1 }
 0x580   :  { %v1657_v23 = vadd.f32 %v1655_v16, %v1648_v22  ;;  %v2302_v16 = vld [vmem:[%s2732_s3 + $0x60] ss:$8 sps:$4 sm:$0xff]  }
 0x581   :  { %v2242_v24 = vpop.f32.mrf.mxu1  ;;  %2246 = vmatpush3.bf16.msra.mxu1 %v2302_v16 }
 0x582   :  { %v1659_v26 = vmax.f32 %v1657_v23, 0.0  ;;  %2247 = vmatprep.subr.bf16.mxu1 %v2357_v1 }
 0x584   :  { %v1660_v29 = vpack.c.bf16 %v1659_v26, %v1658_v25  ;;  %v1875_v26 = vpop.permute.xlu0 %1874 }
 0x585   :  { %2248 = vmatpush3.bf16.msra.mxu1 %v2303_v17 }
 0x586   :  { %2067 = vmatmul.mubr.msk.bf16.vlgmr.msra.gmra.mxu0 %vm50_vm1, %v1660_v29  ;;  %2249 = vmatprep.subr.bf16.mxu1 %v2357_v1  ;;  %v1976_v1 = vsub.s32 2, %v2470_v37 }
 0x587   :  { %1808 = vmatpush1.bf16.msra.mxu0 %v2289_v27  ;;  %1831 = vmatprep.mubr.bf16.mxu0 %v2356_v0  ;;  %v2298_v0 = vld [vmem:[%s2732_s3 + $0xa0] ss:$8 sps:$4 sm:$0xff]   ;;  %s2362_s3 = smov 80  }
 0x588   :  { %1809 = vmatprep.subr.bf16.mxu0 %v2294_v30 }
 0x589   :  { %2250 = vmatpush3.bf16.msra.mxu1 %v2304_v19 }
 0x58b   :  { %1810 = vmatpush1.bf16.msra.mxu0 %v2292_v31 }
 0x58c   :  { %1811 = vmatprep.subr.bf16.mxu0 %v2297_v33 }
 0x58f   :  { %1812 = vmatpush1.bf16.msra.mxu0 %v2295_v34 }
 0x590   :  { %1813 = vmatprep.subr.bf16.mxu0 %v2300_v35 }
 0x593   :  { %1814 = vmatpush1.bf16.msra.mxu0 %v2298_v0  ;;  %v1977_v0 = vrot.slane %v2473_v39, %v1976_v1 }
 0x596   :  { %2076 = vmatmul.mubr.msk.bf16.vlgmr.msra.gmra.mxu0 %vm53_vm2, %v1739_v36 }
 0x646   :  { %v1730_v38 = vpop.f32.mrf.mxu0 }
 0x647   :  { %v1731_v48 = vadd.f32 %v1730_v38, %v1668_v44 }
 0x648   :  { %v1732_v40 = vpop.f32.mrf.mxu0 }
 0x649   :  { %v1733_v7 = vadd.f32 %v1732_v40, %v1672_v63 }
 0x64a   :  { %v1734_v43 = vpop.f32.mrf.mxu0 }
 0x64b   :  { %v1735_v52 = vadd.f32 %v1734_v43, %v1668_v44 }
 0x64c   :  { %v1736_v46 = vpop.f32.mrf.mxu0 }
 0x64d   :  { %v1737_v11 = vadd.f32 %v1736_v46, %v1672_v63 }
 0x656   :  { %v1833_v47 = vpop.f32.mrf.mxu0 }
 0x657   :  { %v1834_v49 = vadd.f32 %v1833_v47, %v1751_v45 }
 0x658   :  { %v1835_v50 = vpop.f32.mrf.mxu0 }
 0x659   :  { %v1842_v51 = vadd.f32 %v1834_v49, %v1731_v48  ;;  %v1836_v3 = vadd.f32 %v1835_v50, %v1755_v62 }
 0x65a   :  { %v1837_v18 = vpop.f32.mrf.mxu0 }
 0x65b   :  { %v2077_v53 = vmul.f32 -1.442695, %v1842_v51  ;;  %v1838_v54 = vadd.f32 %v1837_v18, %v1751_v45 }
 0x65c   :  { %v1839_v5 = vpop.f32.mrf.mxu0 }
 0x65d   :  { %2313 = vpow2.f32 %v2077_v53  ;;  %v1843_v55 = vadd.f32 %v1838_v54, %v1735_v52  ;;  %v1840_v9 = vadd.f32 %v1839_v5, %v1755_v62 }
 0x65f   :  { %v2078_v56 = vmul.f32 -1.442695, %v1843_v55 }
 0x661   :  { %2315 = vpow2.f32 %v2078_v56 }
 0x66a   :  { %v2314_v57 = vpop.eup %2313 }
 0x66b   :  { %v1850_v58 = vadd.f32 1.0, %v2314_v57 }
 0x66d   :  { %2317 = vrcp.f32 %v1850_v58 }
 0x66e   :  { %v2316_v59 = vpop.eup %2315 }
 0x66f   :  { %v1851_v60 = vadd.f32 1.0, %v2316_v59 }
 0x671   :  { %2319 = vrcp.f32 %v1851_v60 }
 0x67a   :  { %v2318_v4 = vpop.eup %2317 }
 0x67b   :  { %v1856_v8 = vmul.f32 %v2318_v4, %v1836_v3  ;;  %v1862_v23 = vsub.f32 1.0, %v2318_v4  ;;  %v1880_v29 = vmul.f32 %v2318_v4, %v1875_v26 }
 0x67d   :  { %v1858_v2 = vadd.f32 %v1856_v8, %v1733_v7 }
 0x67e   :  { %v2320_v10 = vpop.eup %2319 }
 0x67f   :  { %2321 = vtanh.f32 %v1858_v2  ;;  %v1857_v12 = vmul.f32 %v2320_v10, %v1840_v9  ;;  %v1863_v25 = vsub.f32 1.0, %v2320_v10 }
 0x681   :  { %v1859_v28 = vadd.f32 %v1857_v12, %v1737_v11 }
 0x683   :  { %2323 = vtanh.f32 %v1859_v28 }
 0x68c   :  { %v2322_v32 = vpop.eup %2321 }
 0x68d   :  { %1866 = vrot.lane.b32.xlu1 %v2322_v32, %s2361_s30 }
 0x690   :  { %v2324_v15 = vpop.eup %2323 }
 0x691   :  { %1868 = vrot.lane.b32.xlu1 %v2324_v15, %s2361_s30 }
 0x695   :  { %1876 = vrot.lane.b32.xlu1 %v2441_v20, %s2361_s30 }
 0x6ff   :  { %v1867_v21 = vpop.permute.xlu1 %1866 }
 0x700   :  { %v1872_v24 = vmul.f32 %v1867_v21, %v1862_v23 }
 0x702   :  { %v1882_v31 = vadd.f32 %v1880_v29, %v1872_v24 }
 0x703   :  { %v1869_v22 = vpop.permute.xlu1 %1868 }
 0x704   :  { %v1873_v30 = vmul.f32 %v1869_v22, %v1863_v25 }
 0x707   :  { %v1877_v27 = vpop.permute.xlu1 %1876 }
 0x708   :  { %v1881_v20 = vmul.f32 %v2320_v10, %v1877_v27 }
 0x70a   :  { %v1883_v33 = vadd.f32 %v1881_v20, %v1873_v30 }
 0x70c   :  { %v1894_v34 = vpack.c.bf16 %v1883_v33, %v1882_v31 }
 0x70e   :  { %1904 = vrot.lane.b32.xlu0 %v1894_v34, %s2361_s30 }
 0x780   :  { %v1905_v35 = vpop.permute.xlu0 %1904 }
 0x781   :  { %2252 = vmatmul.mubr.msk.bf16.vlgmr.msra.gmra.mxu1 %vm53_vm2, %v1905_v35 }
 0x841   :  { %v1967_v36 = vpop.f32.mrf.mxu1 }
 0x842   :  { %v1978_v38 = vadd.f32 %v1977_v0, %v1967_v36 }
 0x843   :  { %v2253_v40 = vpop.f32.mrf.mxu1 }
 0x844   :  { %v1980_v41 = vsel %vm85_vm5, %v1978_v38, -inf }
 0x845   :  { %1981 = vmax.xlane.f32.xlu1 %v1980_v41  ;;  %v1970_v42 = vpop.f32.mrf.mxu1 }
 0x846   :  { %v1979_v43 = vadd.f32 %v1977_v0, %v1970_v42 }
 0x847   :  { %v2254_v44 = vpop.f32.mrf.mxu1 }
 0x848   :  { %v1983_v45 = vsel %vm85_vm5, %v1979_v43, -inf }
 0x849   :  { %1984 = vmax.xlane.f32.xlu0 %v1983_v45 }
 0x856   :  { %2006 = vrot.lane.b32.xlu1 %v1883_v33, %s2362_s3 }
 0x85a   :  { %2010 = vrot.lane.b32.xlu1 %v2491_v6, %s2362_s3 }
 0x85f   :  { %2004 = vrot.lane.b32.xlu0 %v1882_v31, %s2362_s3 }
 0x8ce   :  { %v1982_v37 = vpop.xlane.xlu1 %1981 }
 0x8cf   :  { %v1986_v46 = vsub.f32 %v1978_v38, %v1982_v37 }
 0x8d1   :  { %v1988_v39 = vmul.f32 1.442695, %v1986_v46 }
 0x8d2   :  { %v1985_v47 = vpop.xlane.xlu0 %1984  ;;  %v2007_v6 = vpop.permute.xlu1 %2006 }
 0x8d3   :  { %2325 = vpow2.f32 %v1988_v39  ;;  %v1987_v48 = vsub.f32 %v1979_v43, %v1985_v47 }
 0x8d5   :  { %v1990_v49 = vmul.f32 1.442695, %v1987_v48 }
 0x8d6   :  { %v2005_v53 = vpop.permute.xlu0 %2004  ;;  %v2011_v54 = vpop.permute.xlu1 %2010 }
 0x8d7   :  { %2327 = vpow2.f32 %v1990_v49 }
 0x8e0   :  { %v2326_v50 = vpop.eup %2325 }
 0x8e1   :  { %v1992_v51 = vsel %vm85_vm5, %v2326_v50, 0.0 }
 0x8e2   :  { %1993 = vadd.xlane.f32.xlu0 %v1992_v51 }
 0x8e4   :  { %v2328_v18 = vpop.eup %2327 }
 0x8e5   :  { %v1995_v52 = vsel %vm85_vm5, %v2328_v18, 0.0 }
 0x8e6   :  { %1996 = vadd.xlane.f32.xlu1 %v1995_v52 }
 0x8f7   :  { %1886 = vrot.lane.b32.xlu1 %v1882_v31, %s2361_s30 }
 0x8f8   :  { %2012 = vrot.lane.b32.xlu0 %v2502_v14, %s2362_s3 }
 0x8fc   :  { %1888 = vrot.lane.b32.xlu0 %v1883_v33, %s2361_s30 }
 0x96b   :  { %v1994_v55 = vpop.xlane.xlu0 %1993 }
 0x96c   :  { %2329 = vlog2.f32 %v1994_v55 }
 0x96f   :  { %v1997_v56 = vpop.xlane.xlu1 %1996  ;;  %v2013_v57 = vpop.permute.xlu0 %2012 }
 0x970   :  { %2331 = vlog2.f32 %v1997_v56 }
 0x973   :  { %v1887_v58 = vpop.permute.xlu1 %1886  ;;  %v1889_v59 = vpop.permute.xlu0 %1888 }
 0x974   :  { %1892 = vst.msk [vmem:[#allocation2] sm:$0xff] %vm53_vm2, %v1887_v58  ;;  %1893 = vst.msk [vmem:[#allocation2 + $0x8] sm:$0xff] %vm53_vm2, %v1889_v59 }
 0x979   :  { %v2330_v60 = vpop.eup %2329 }
 0x97a   :  { %v1999_v61 = vmul.f32 0.6931472, %v2330_v60 }
 0x97c   :  { %v2002_v62 = vsub.f32 %v1986_v46, %v1999_v61 }
 0x97d   :  { %v2332_v14 = vpop.eup %2331 }
 0x97e   :  { %v2001_v63 = vmul.f32 0.6931472, %v2332_v14  ;;  %v2016_v3 = vsel %vm85_vm5, %v2002_v62, %v2005_v53 }
 0x97f   :  { %v2019_v4 = vsel %vm2018_vm14, %v2016_v3, %v2011_v54 }
 0x980   :  { %v2003_v5 = vsub.f32 %v1987_v48, %v2001_v63  ;;  %v2022_v7 = vsel %vm2021_vm15, %v2019_v4, 0.0 }
 0x981   :  { %2024 = vst [vmem:[%s2734_s5] sm:$0xff] %v2022_v7 }
 0x982   :  { %v2017_v8 = vsel %vm85_vm5, %v2003_v5, %v2007_v6 }
 0x983   :  { %v2020_v2 = vsel %vm2018_vm14, %v2017_v8, %v2013_v57 }
 0x984   :  { %v2023_v9 = vsel %vm2021_vm15, %v2020_v2, 0.0 }
 0x985   :  { %2025 = vst [vmem:[%s2734_s5 + $0x8] sm:$0xff] %v2023_v9 }
 0x986   :  { %2030 = vsyncpa [#allocation4], 1 }

</bundles_post_ra>
